<compile_context>
chip_gen: v7x
topology: tpu7x:2x2x1
jax: 0.10.0
libtpu: 0.0.40
codegen_flags: <defaults>
</compile_context>

<pallas_src>
import functools

import jax
import jax.numpy as jnp
import numpy as np
from jax.experimental import pallas as pl
from jax.experimental.pallas import tpu as pltpu

NEG_SLOPE = 0.01                      # nn.LeakyReLU default
_NT = (((1,), (1,)), ((), ()))        # contract the last dim of both operands


def _leaky_relu(x):
    return jnp.where(x >= 0, x, NEG_SLOPE * x)


# ----------------------------------------------------------------------------
# Kernels
# ----------------------------------------------------------------------------
def _decoder_kernel(x_ref, w1_ref, b1_ref, w2_ref, b2_ref, pred_ref):
    """pred_row = LeakyReLU(x @ W1 + b1) @ w2 + b2, stored lane-dense (1, tm)."""
    h = jnp.dot(x_ref[...], w1_ref[...], preferred_element_type=jnp.float32)
    h = _leaky_relu(h + b1_ref[...])
    # (1, D) x (tm, D)^T -> (1, tm): result is lane-dense, full-width store.
    p = jax.lax.dot_general(w2_ref[...], h, _NT,
                            preferred_element_type=jnp.float32)
    pred_ref[0] = (p + b2_ref[0, 0]).astype(pred_ref.dtype)


def _decoder_zero_kernel(
    x_ref, w1cat_ref, b1cat_ref, w2_ref, b2_ref,
    z2w_ref, z2b_ref, z3w_ref, z3b_ref,
    pred_ref, zprob_ref, *, d,
):
    """Main branch + zero_logit branch.  Layer-1 weights of both branches are
    fused into one (D, 2D) matmul so x goes through the MXU only once."""
    hz = jnp.dot(x_ref[...], w1cat_ref[...], preferred_element_type=jnp.float32)
    hz = _leaky_relu(hz + b1cat_ref[...])
    h = hz[:, :d]            # main-branch hidden
    z = hz[:, d:]            # zero_logit hidden (layer 1)

    p = jax.lax.dot_general(w2_ref[...], h, _NT,
                            preferred_element_type=jnp.float32)
    pred_ref[0] = (p + b2_ref[0, 0]).astype(pred_ref.dtype)

    z = jnp.dot(z.astype(z2w_ref.dtype), z2w_ref[...],
                preferred_element_type=jnp.float32)
    z = _leaky_relu(z + z2b_ref[...])
    zl = jax.lax.dot_general(z3w_ref[...], z, _NT,
                             preferred_element_type=jnp.float32)
    zprob_ref[0] = jax.nn.sigmoid(zl + z3b_ref[0, 0]).astype(zprob_ref.dtype)


# ----------------------------------------------------------------------------
# Wrapper
# ----------------------------------------------------------------------------
def cellfm_decoder(expr_emb, params, *, zero=False, tm=256,
                   mxu_dtype=jnp.bfloat16):
    """expr_emb: [B, L, D].  Returns pred [B, L] (and zero_prob [B, L] if zero).

    tm: row tile.  256 is a good default; use 512 on v6e/v7x if VMEM allows.
        Pick tm so the grid (= cdiv(B*L, tm)) stays >= 2 so the "parallel"
        row axis can be sharded across TensorCores (v7x megacore).
    mxu_dtype: dtype of the MXU operands.  bf16 halves weight DMA/VMEM and
        doubles MXU throughput; accumulation, bias adds and nonlinearities
        stay in f32.  Use jnp.float32 for exact f32 semantics.
    """
    B, L, D = expr_emb.shape
    M = B * L
    x = expr_emb.reshape(M, D)

    # Row tile: multiple of 16 (bf16 sublane packing); clamp so tiny inputs
    # are not padded out to a huge tile.
    tm = int(tm)
    tm = max(16, ((tm + 15) // 16) * 16)
    tm = min(tm, ((M + 15) // 16) * 16)

    m_pad = pl.cdiv(M, tm) * tm
    if m_pad != M:
        x = jnp.pad(x, ((0, m_pad - M), (0, 0)))
    n_tiles = m_pad // tm
    grid = (n_tiles,)

    x = x.astype(mxu_dtype)

    row_spec = pl.BlockSpec((tm, D), lambda i: (i, 0))
    # Lane-dense output: one (1, tm) row per tile, reshaped back in the wrapper.
    out_spec = pl.BlockSpec((1, 1, tm), lambda i: (i, 0, 0))
    out_shape = jax.ShapeDtypeStruct((n_tiles, 1, tm), jnp.float32)

    def full(shape):  # grid-invariant (weight / bias) block
        return pl.BlockSpec(shape, lambda i: (0,) * len(shape))

    smem_scalar = pl.BlockSpec(memory_space=pltpu.MemorySpace.SMEM)

    cparams = pltpu.CompilerParams(
        dimension_semantics=("parallel",),
        vmem_limit_bytes=48 * 1024 * 1024,
    )

    w1 = params["w1"].astype(mxu_dtype)   # (D, D)   [in, out]
    b1 = params["b1"]                     # (1, D)   f32
    w2 = params["w2"]                     # (1, D)   f32 row (PyTorch layout)
    b2 = params["b2"]                     # (1, 1)   f32 -> SMEM

    if not zero:
        pred_tiles = pl.pallas_call(
            _decoder_kernel,
            out_shape=out_shape,
            grid_spec=pltpu.PrefetchScalarGridSpec(
                num_scalar_prefetch=0,
                grid=grid,
                in_specs=[row_spec, full((D, D)), full((1, D)), full((1, D)),
                          smem_scalar],
                out_specs=out_spec,
            ),
            compiler_params=cparams,
        )(x, w1, b1, w2, b2)
        return pred_tiles.reshape(m_pad)[:M].reshape(B, L)

    # zero branch: fuse linear1 and zero_logit layer-1 into a single matmul.
    w1cat = jnp.concatenate([params["w1"], params["z1w"]], axis=1).astype(mxu_dtype)
    b1cat = jnp.concatenate([params["b1"], params["z1b"]], axis=1)
    z2w = params["z2w"].astype(mxu_dtype)
    z2b = params["z2b"]
    z3w = params["z3w"]                   # (1, D) f32 row
    z3b = params["z3b"]                   # (1, 1) f32 -> SMEM

    pred_tiles, zprob_tiles = pl.pallas_call(
        functools.partial(_decoder_zero_kernel, d=D),
        out_shape=(out_shape, out_shape),
        grid_spec=pltpu.PrefetchScalarGridSpec(
            num_scalar_prefetch=0,
            grid=grid,
            in_specs=[
                row_spec,
                full((D, 2 * D)), full((1, 2 * D)),      # fused layer-1
                full((1, D)), smem_scalar,               # linear2
                full((D, D)), full((1, D)),              # zero_logit layer 2
                full((1, D)), smem_scalar,               # zero_logit layer 3
            ],
            out_specs=[out_spec, out_spec],
        ),
        compiler_params=cparams,
    )(x, w1cat, b1cat, w2, b2, z2w, z2b, z3w, z3b)
    pred = pred_tiles.reshape(m_pad)[:M].reshape(B, L)
    zprob = zprob_tiles.reshape(m_pad)[:M].reshape(B, L)
    return pred, zprob


# ----------------------------------------------------------------------------
# Deterministic parameter init (PyTorch nn.Linear-style uniform bounds).
# D x D weights are stored [in, out]; the final projections are stored as
# (1, D) rows (native PyTorch layout for a Linear(D, 1)); biases as (1, out).
# ----------------------------------------------------------------------------
def init_params(key, emb_dims, zero=False):
    def dense(key, fan_in, fan_out):
        kw, kb = jax.random.split(key)
        bound = 1.0 / np.sqrt(fan_in)
        w = jax.random.uniform(kw, (fan_in, fan_out), jnp.float32, -bound, bound)
        b = jax.random.uniform(kb, (1, fan_out), jnp.float32, -bound, bound)
        return w, b

    keys = jax.random.split(key, 5)
    w1, b1 = dense(keys[0], emb_dims, emb_dims)
    w2c, b2 = dense(keys[1], emb_dims, 1)
    params = {"w1": w1, "b1": b1, "w2": w2c.T, "b2": b2}
    if zero:
        z1w, z1b = dense(keys[2], emb_dims, emb_dims)
        z2w, z2b = dense(keys[3], emb_dims, emb_dims)
        z3w, z3b = dense(keys[4], emb_dims, 1)
        params.update(z1w=z1w, z1b=z1b, z2w=z2w, z2b=z2b, z3w=z3w.T, z3b=z3b)
    return params


# ----------------------------------------------------------------------------
# Pure-JAX reference (mirrors the PyTorch forward exactly, in f32)
# ----------------------------------------------------------------------------
def reference(expr_emb, params, zero=False):
    h = _leaky_relu(expr_emb @ params["w1"] + params["b1"][0])
    pred = h @ params["w2"][0] + params["b2"][0, 0]
    if not zero:
        return pred
    z = _leaky_relu(expr_emb @ params["z1w"] + params["z1b"][0])
    z = _leaky_relu(z @ params["z2w"] + params["z2b"][0])
    zp = jax.nn.sigmoid(z @ params["z3w"][0] + params["z3b"][0, 0])
    return pred, zp


if __name__ == "__main__":
    B, L, D = 2, 8, 32
    key = jax.random.PRNGKey(0)
    k_x, k_p = jax.random.split(key)
    expr_emb = jax.random.normal(k_x, (B, L, D), jnp.float32)

    # --- exact f32 path --------------------------------------------------
    params = init_params(k_p, D, zero=False)
    pred = jax.block_until_ready(
        cellfm_decoder(expr_emb, params, zero=False, mxu_dtype=jnp.float32))
    np.testing.assert_allclose(
        np.asarray(pred), np.asarray(reference(expr_emb, params, zero=False)),
        rtol=1e-5, atol=1e-5)

    params_z = init_params(k_p, D, zero=True)
    pred_z, zprob = cellfm_decoder(expr_emb, params_z, zero=True,
                                   mxu_dtype=jnp.float32)
    jax.block_until_ready((pred_z, zprob))
    ref_pred, ref_zprob = reference(expr_emb, params_z, zero=True)
    np.testing.assert_allclose(np.asarray(pred_z), np.asarray(ref_pred),
                               rtol=1e-5, atol=1e-5)
    np.testing.assert_allclose(np.asarray(zprob), np.asarray(ref_zprob),
                               rtol=1e-5, atol=1e-5)

    # --- bf16-MXU perf path (default), looser tolerance -------------------
    pred_bf = jax.block_until_ready(cellfm_decoder(expr_emb, params, zero=False))
    np.testing.assert_allclose(
        np.asarray(pred_bf), np.asarray(reference(expr_emb, params, zero=False)),
        rtol=2e-2, atol=2e-2)
    pred_zb, zprob_b = cellfm_decoder(expr_emb, params_z, zero=True)
    jax.block_until_ready((pred_zb, zprob_b))
    np.testing.assert_allclose(np.asarray(pred_zb), np.asarray(ref_pred),
                               rtol=2e-2, atol=2e-2)
    np.testing.assert_allclose(np.asarray(zprob_b), np.asarray(ref_zprob),
                               rtol=2e-2, atol=2e-2)

    assert pred.shape == (B, L) and pred_z.shape == (B, L) and zprob.shape == (B, L)
    print("KERNEL_OK")
</pallas_src>

<mosaic_0001>
module attributes {stable_mosaic.version = 11 : i64} {
  func.func @_decoder_kernel(%arg0: i32, %arg1: memref<16x32xf32, #tpu.memory_space<vmem>>, %arg2: memref<32x32xf32, #tpu.memory_space<vmem>>, %arg3: memref<1x32xf32, #tpu.memory_space<vmem>>, %arg4: memref<1x32xf32, #tpu.memory_space<vmem>>, %arg5: memref<1x1xf32, #tpu.memory_space<smem>>, %arg6: memref<1x1x16xf32, #tpu.memory_space<vmem>>) attributes {dimension_semantics = [#tpu.dimension_semantics<parallel>], iteration_bounds = array<i64: 1>, scalar_prefetch = 0 : i64, scratch_operands = 0 : i64, tpu.core_type = #tpu.core_type<tc>, window_params = [{transform_indices = @transform_0, window_bounds = array<i64: 16, 32>}, {pipeline_mode = #tpu.pipeline_mode<synchronous>, transform_indices = @transform_1, window_bounds = array<i64: 32, 32>}, {pipeline_mode = #tpu.pipeline_mode<synchronous>, transform_indices = @transform_2, window_bounds = array<i64: 1, 32>}, {pipeline_mode = #tpu.pipeline_mode<synchronous>, transform_indices = @transform_3, window_bounds = array<i64: 1, 32>}, {transform_indices = @transform_4, window_bounds = array<i64: 1, 1>}, {transform_indices = @transform_5, window_bounds = array<i64: 1, 1, 16>}]} {
    %c0 = arith.constant 0 : index
    %c0_0 = arith.constant 0 : index
    %0 = vector.load %arg1[%c0, %c0_0] : memref<16x32xf32, #tpu.memory_space<vmem>>, vector<16x32xf32>
    %c0_1 = arith.constant 0 : index
    %c0_2 = arith.constant 0 : index
    %1 = vector.load %arg2[%c0_1, %c0_2] : memref<32x32xf32, #tpu.memory_space<vmem>>, vector<32x32xf32>
    %cst = arith.constant dense<0.000000e+00> : vector<16x32xf32>
    %2 = tpu.matmul %0, %1, %cst {dimension_numbers = #tpu.dot_dimension_numbers<[1], [0], [0], [1], [0, 0, 1, 1], [], []>} : vector<16x32xf32>, vector<32x32xf32>, vector<16x32xf32> -> vector<16x32xf32>
    %c0_3 = arith.constant 0 : index
    %c0_4 = arith.constant 0 : index
    %3 = vector.load %arg3[%c0_3, %c0_4] : memref<1x32xf32, #tpu.memory_space<vmem>>, vector<1x32xf32>
    %4 = vector.broadcast %3 : vector<1x32xf32> to vector<16x32xf32>
    %5 = arith.addf %2, %4 : vector<16x32xf32>
    %cst_5 = arith.constant 0.000000e+00 : f32
    %6 = vector.broadcast %cst_5 : f32 to vector<16x32xf32>
    %7 = arith.cmpf oge, %5, %6 : vector<16x32xf32>
    %cst_6 = arith.constant 0.00999999977 : f32
    %8 = vector.broadcast %cst_6 : f32 to vector<16x32xf32>
    %9 = arith.mulf %8, %5 : vector<16x32xf32>
    %10 = arith.select %7, %5, %9 : vector<16x32xi1>, vector<16x32xf32>
    %c0_7 = arith.constant 0 : index
    %c0_8 = arith.constant 0 : index
    %11 = vector.load %arg4[%c0_7, %c0_8] : memref<1x32xf32, #tpu.memory_space<vmem>>, vector<1x32xf32>
    %cst_9 = arith.constant dense<0.000000e+00> : vector<1x16xf32>
    %12 = tpu.matmul %11, %10, %cst_9 {dimension_numbers = #tpu.dot_dimension_numbers<[1], [1], [0], [0], [0, 0, 1, 0], [], []>} : vector<1x32xf32>, vector<16x32xf32>, vector<1x16xf32> -> vector<1x16xf32>
    %c0_10 = arith.constant 0 : index
    %c0_11 = arith.constant 0 : index
    %13 = memref.load %arg5[%c0_10, %c0_11] : memref<1x1xf32, #tpu.memory_space<smem>>
    %14 = vector.broadcast %13 : f32 to vector<1x16xf32>
    %15 = arith.addf %12, %14 : vector<1x16xf32>
    %c0_12 = arith.constant 0 : index
    %c0_13 = arith.constant 0 : index
    %c0_14 = arith.constant 0 : index
    %16 = vector.load %arg6[%c0_12, %c0_13, %c0_14] : memref<1x1x16xf32, #tpu.memory_space<vmem>>, vector<1x1x16xf32>
    %17 = vector.shape_cast %16 : vector<1x1x16xf32> to vector<1x16xf32>
    %18 = vector.shape_cast %15 : vector<1x16xf32> to vector<1x1x16xf32>
    tpu.vector_store %arg6[%c0_12, %c0_13, %c0_14], %18 {strides = array<i32>} : memref<1x1x16xf32, #tpu.memory_space<vmem>>, vector<1x1x16xf32>,
    return
  }
  func.func @transform_0(%arg0: i32) -> (i32, i32) {
    %c0_i32 = arith.constant 0 : i32
    %c0_i32_0 = arith.constant 0 : i32
    return %arg0, %c0_i32 : i32, i32
  }
  func.func @transform_1(%arg0: i32) -> (i32, i32) {
    %c0_i32 = arith.constant 0 : i32
    %c0_i32_0 = arith.constant 0 : i32
    %c0_i32_1 = arith.constant 0 : i32
    return %c0_i32, %c0_i32_0 : i32, i32
  }
  func.func @transform_2(%arg0: i32) -> (i32, i32) {
    %c0_i32 = arith.constant 0 : i32
    %c0_i32_0 = arith.constant 0 : i32
    %c0_i32_1 = arith.constant 0 : i32
    return %c0_i32, %c0_i32_0 : i32, i32
  }
  func.func @transform_3(%arg0: i32) -> (i32, i32) {
    %c0_i32 = arith.constant 0 : i32
    %c0_i32_0 = arith.constant 0 : i32
    %c0_i32_1 = arith.constant 0 : i32
    return %c0_i32, %c0_i32_0 : i32, i32
  }
  func.func @transform_4(%arg0: i32) -> (i32, i32) {
    %c0_i32 = arith.constant 0 : i32
    %c0_i32_0 = arith.constant 0 : i32
    %c0_i32_1 = arith.constant 0 : i32
    return %c0_i32, %c0_i32_0 : i32, i32
  }
  func.func @transform_5(%arg0: i32) -> (i32, i32, i32) {
    %c0_i32 = arith.constant 0 : i32
    %c0_i32_0 = arith.constant 0 : i32
    %c0_i32_1 = arith.constant 0 : i32
    return %arg0, %c0_i32, %c0_i32_0 : i32, i32, i32
  }
}

</mosaic_0001>

<bundles_post_ra>
// kernel: tpu_custom_call.1
= control target key start
LH: loop header
LB: loop body
LE: loop exit
PB: predicated region body
PF: predicated region fallthrough
CT: control target
= control target key end

     0   :  { %11 = vsyncpa [#allocation4], 0  ;;  %s464_s0 = inlined_call_operand.hbm [shape: f32[16,32], index: 0, kind: input, shape index: {}]   ;;  %s465_s1 = inlined_call_operand.hbm [shape: f32[32,32], index: 1, kind: input, shape index: {}]   ;;  %s466_s2 = inlined_call_operand.vmem [shape: f32[1,32], index: 2, kind: input, shape index: {}]   ;;  %s467_s3 = inlined_call_operand.vmem [shape: f32[1,32], index: 3, kind: input, shape index: {}]   ;;  %s468_s4 = inlined_call_operand.<no memory space> [shape: f32[1,1], index: 4, kind: input, shape index: {}]   ;;  %s469_s5 = inlined_call_operand.hbm [shape: f32[1,1,16], index: 5, kind: output, shape index: {}]  }
   0x1   :  { %12 = vsyncpa [#allocation7], 0 }
   0x2   :  { %13 = vsyncpa [#allocation5], 0  ;;  %s376_s18 = smov [#allocation3]   ;;  %s304_s22 = scalar_lea.hbm %s464_s0, 256 }
   0x3   :  { %s19_s19 = sshll.u32 %s376_s18, 4  ;;  %p305_p0 = scmp.ne.s32.totalorder %s464_s0, %s304_s22  ;;  %s20_s19 = int_to_ptr.vmem [resolvable:$true] %s19_s19 }
   0x4   :  { %p308_p1 = scmp.lt.u32.totalorder %s304_s22, %s464_s0 }
   0x6   :  { %p310_p2 = pnand %p308_p1, %p305_p0 }
   0x8   :  { %313 = shalt.err (!%p310_p2)
}
   0x9   :  { %s314_s27 = scalar_lea.vmem %s20_s19, 256  ;;  %p319_p4 = scmp.lt.s32.totalorder %s20_s19, %s20_s19 }
   0xa   :  { %p315_p3 = scmp.ne.s32.totalorder %s20_s19, %s314_s27  ;;  %p320_p5 = scmp.lt.s32.totalorder %s314_s27, %s314_s27 }
   0xc   :  { %p321_p6 = por %p320_p5, %p319_p4 }
   0xe   :  { %p322_p7 = pnand %p321_p6, %p315_p3 }
  0x10   :  { %325 = shalt.err (!%p322_p7)
}
  0x11   :  { %s377_s28 = smov 128   ;;  %s378_s29 = smov 8  }
  0x12   :  { %25 = dma.hbm_to_vmem [thread:$0]  %s464_s0, 256, %s20_s19, [#allocation4], %s377_s28, %s377_s28, %s378_s29  }
  0x13   :  { %s379_s7 = smov [#allocation6]   ;;  %s326_s11 = scalar_lea.hbm %s465_s1, 512 }
  0x14   :  { %s31_s8 = sshll.u32 %s379_s7, 4  ;;  %p327_p8 = scmp.ne.s32.totalorder %s465_s1, %s326_s11  ;;  %s32_s8 = int_to_ptr.vmem [resolvable:$true] %s31_s8 }
  0x15   :  { %p330_p9 = scmp.lt.u32.totalorder %s326_s11, %s465_s1 }
  0x17   :  { %p332_p10 = pnand %p330_p9, %p327_p8 }
  0x19   :  { %335 = shalt.err (!%p332_p10)
}
  0x1a   :  { %s336_s16 = scalar_lea.vmem %s32_s8, 512  ;;  %p341_p12 = scmp.lt.s32.totalorder %s32_s8, %s32_s8 }
  0x1b   :  { %p337_p11 = scmp.ne.s32.totalorder %s32_s8, %s336_s16  ;;  %p342_p13 = scmp.lt.s32.totalorder %s336_s16, %s336_s16 }
  0x1d   :  { %p343_p0 = por %p342_p13, %p341_p12 }
  0x1f   :  { %p344_p1 = pnand %p343_p0, %p337_p11 }
  0x21   :  { %347 = shalt.err (!%p344_p1)
}
  0x22   :  { %37 = dma.hbm_to_vmem [thread:$0]  %s465_s1, 512, %s32_s8, [#allocation7], %s377_s28, %s377_s28, %s378_s29  }
  0x23   :  { %370 = dma.done.wait [#allocation4], 256  }
  0x24   :  { %371 = vsyncadd [#allocation4], 4294967040 }
  0x25   :  { %372 = dma.done.wait [#allocation7], 512  }
  0x26   :  { %373 = vsyncadd [#allocation7], 4294966784  ;;  %vm63_vm0 = vcmask 261120   ;;  %v52_v0 = vld [vmem:[#allocation6] sm:$0xff]  ;;  %v53_v1 = vld [vmem:[#allocation6 + $0x8] sm:$0xff]  ;;  %v380_v8 = vmov 0.0|0.0   ;;  %v153_v21 = vstv %s468_s4 }
  0x27   :  { %v54_v2 = vld [vmem:[#allocation6 + $0x10] sm:$0xff]  ;;  %v284_v3 = vpack.c.bf16 %v53_v1, %v52_v0  ;;  %v55_v4 = vld [vmem:[#allocation6 + $0x18] sm:$0xff]  ;;  %292 = vmatprep.subr.bf16.mxu1 %v380_v8  ;;  %vm381_vm1 = vmmov 0   ;;  %v382_v9 = vmov 0.0   ;;  %vm294_vm4 = vmpackc.low %vm63_vm0, %vm63_vm0  ;;  %s383_s22 = smov [#allocation8]   ;;  %vm233_vm5 = vcmask 122880  }
  0x28   :  { %v50_v5 = vld [vmem:[#allocation3] sm:$0xff]  ;;  %v288_v6 = vpack.c.bf16 %v55_v4, %v54_v2  ;;  %v51_v7 = vld [vmem:[#allocation3 + $0x8] sm:$0xff]  ;;  %281 = vmatprep.mubr.msk.f32.mxu1 %vm381_vm1, %v382_v9  ;;  %s241_s23 = sshll.u32 %s383_s22, 4  ;;  %s242_s23 = int_to_ptr.vmem [resolvable:$true] %s241_s23 }
  0x29   :  { %274 = vmatprep.mubr.msk.f32.mxu0 %vm63_vm0, %v50_v5  ;;  %285 = vmatprep.subr.bf16.mxu0 %v284_v3  ;;  %v251_v10 = vld [vmem:[%s466_s2] ss:$0 sm:$0xff]  ;;  %s348_s24 = scalar_lea.vmem %s242_s23, 16  ;;  %s352_s25 = scalar_lea.vmem %s242_s23, 32 }
  0x2a   :  { %287 = vmatpush3.bf16.msra.mxu0 %v284_v3  ;;  %v151_v20 = vld [vmem:[%s467_s3] sm:$0x1]  ;;  %p349_p2 = scmp.ne.s32.totalorder %s242_s23, %s348_s24  ;;  %p353_p3 = scmp.lt.s32.totalorder %s242_s23, %s242_s23 }
  0x2b   :  { %289 = vmatprep.subr.bf16.mxu0 %v288_v6  ;;  %p354_p4 = scmp.lt.s32.totalorder %s352_s25, %s348_s24 }
  0x2d   :  { %p355_p5 = por %p354_p4, %p353_p3 }
  0x2e   :  { %291 = vmatpush3.bf16.msra.mxu0 %v288_v6 }
  0x2f   :  { %p356_p6 = pnand %p355_p5, %p349_p2 }
  0x31   :  { %275 = vmatmul.mubr.msk.f32.vlgmr.msra.gmra.mrb[0].mxu0 %vm63_vm0, %v51_v7 }
 0x104   :  { %v276_v11 = vpop.f32.mrb[0].mxu0 }
 0x105   :  { %v142_v12 = vadd.f32 %v276_v11, %v251_v10  ;;  %v136_v13 = vpop.f32.mrb[1].mxu0 }
 0x106   :  { %v137_v14 = vadd.f32 %v251_v10, %v136_v13 }
 0x107   :  { %vm146_vm2 = vcmp.ge.f32.partialorder %v142_v12, 0.0  ;;  %v148_v15 = vmul.f32 0.01, %v142_v12 }
 0x108   :  { %vm145_vm3 = vcmp.ge.f32.partialorder %v137_v14, 0.0  ;;  %v147_v16 = vmul.f32 0.01, %v137_v14 }
 0x109   :  { %v150_v17 = vsel %vm146_vm2, %v142_v12, %v148_v15 }
 0x10a   :  { %v149_v18 = vsel %vm145_vm3, %v137_v14, %v147_v16 }
 0x10b   :  { %v293_v19 = vpack.c.bf16 %v150_v17, %v149_v18 }
 0x10d   :  { %295 = vmatpush3.bf16.xpose.msk.msra.mxu1 %vm294_vm4, %v293_v19 }
 0x114   :  { %282 = vmatmul.mubr.msk.f32.vlgmr.msra.gmra.mrb[0].mxu1 %vm63_vm0, %v151_v20 }
 0x1e7   :  { %v229_v22 = vpop.f32.mrb[0].mxu1 }
 0x1e8   :  { %v230_v23 = vadd.f32 %v229_v22, %v153_v21  ;;  %v283_v24 = vpop.f32.mrb[1].mxu1 }
 0x1ea   :  { %234 = vst.msk [vmem:[#allocation8] sm:$0x1] %vm233_vm5, %v230_v23 }
 0x1eb   :  { %359 = shalt.err (!%p356_p6)
}
 0x1ec   :  { %s360_s4 = scalar_lea.hbm %s469_s5, 16 }
 0x1ed   :  { %p361_p7 = scmp.ne.s32.totalorder %s469_s5, %s360_s4  ;;  %p364_p8 = scmp.lt.u32.totalorder %s360_s4, %s469_s5 }
 0x1ef   :  { %p366_p9 = pnand %p364_p8, %p361_p7 }
 0x1f1   :  { %369 = shalt.err (!%p366_p9)
}
 0x1f2   :  { %244 = dma.vmem_to_hbm [thread:$0]  %s242_s23, 16, %s469_s5, [#allocation5]  }
 0x1f3   :  { %374 = dma.done.wait [#allocation5], 16  }
 0x1f4   :  { %375 = vsyncadd [#allocation5], 4294967280 }
 0x1f5   :  { %248 = vsyncpa [#allocation4], 1 }
 0x1f6   :  { %249 = vsyncpa [#allocation7], 1 }
 0x1f7   :  { %250 = vsyncpa [#allocation5], 1 }

</bundles_post_ra>
